<compile_context>
chip_gen: v5e
topology: v5e:2x2
jax: 0.10.0
libtpu: 0.0.40
codegen_flags: <defaults>
</compile_context>

<pallas_src>
import functools

import jax
import jax.numpy as jnp
from jax import lax
from jax.experimental import pallas as pl
from jax.experimental.pallas import tpu as pltpu


# ---------------------------------------------------------------------------
# Kernel A: K/V projection, once per (batch, head-group).
# ---------------------------------------------------------------------------
def _kv_proj_kernel(kv_ref, wk_ref, wv_ref, k_out_ref, v_out_ref):
    kv = kv_ref[0]                                                   # (Lk, D)
    k_out_ref[0, 0] = jnp.dot(kv, wk_ref[0],
                              preferred_element_type=jnp.float32
                              ).astype(k_out_ref.dtype)             # (Lk, hb)
    v_out_ref[0, 0] = jnp.dot(kv, wv_ref[0],
                              preferred_element_type=jnp.float32
                              ).astype(v_out_ref.dtype)             # (Lk, hb)


# ---------------------------------------------------------------------------
# Kernel B: RMS-norm + Q projection + attention + deferred O projection + residual.
# grid = (batch, q_tiles, head_groups); head_groups is the innermost
# "arbitrary" axis; ctx is staged per group and Wo applied at the last group.
# ---------------------------------------------------------------------------
def _t5_cross_attn_kernel(hid_ref, k_ref, v_ref, lnw_ref, wq_ref, wo_ref,
                          out_ref, normed_ref, ctx_ref, *,
                          eps, d_kv, heads_per_group, num_groups):
    g = pl.program_id(2)

    @pl.when(g == 0)
    def _init():
        # T5LayerNorm: RMS norm (no mean subtraction), variance in fp32,
        # result kept in the input dtype so the Wq matmul runs at full MXU rate.
        hid = hid_ref[0]                                             # (tq, D)
        x32 = hid.astype(jnp.float32)
        var = jnp.mean(x32 * x32, axis=-1, keepdims=True)
        lnw = lnw_ref[...].astype(hid.dtype)                         # (1, D)
        normed_ref[...] = (x32 * lax.rsqrt(var + eps)).astype(hid.dtype) * lnw

    normed = normed_ref[...]                                         # (tq, D)
    dtype = normed.dtype

    # Head-group Q projection: lane-dense hb = HB*d_kv output columns.
    q_blk = jnp.dot(normed, wq_ref[g],
                    preferred_element_type=jnp.float32).astype(dtype)  # (tq, hb)
    k_blk = k_ref[0, g]                                              # (Lk, hb)
    v_blk = v_ref[0, g]                                              # (Lk, hb)

    ctx_parts = []
    for h in range(heads_per_group):                   # small static unroll
        sl = slice(h * d_kv, (h + 1) * d_kv)
        q_h = q_blk[:, sl]                                           # (tq, d_kv)
        k_h = k_blk[:, sl]                                           # (Lk, d_kv)
        v_h = v_blk[:, sl]                                           # (Lk, d_kv)
        # scores = q_h @ k_h^T without materializing a transpose. T5 applies
        # no 1/sqrt(d_kv) scaling; position_bias is zero (no rel-bias, no mask).
        scores = lax.dot_general(q_h, k_h, (((1,), (1,)), ((), ())),
                                 preferred_element_type=jnp.float32)  # (tq, Lk)
        scores = scores - jnp.max(scores, axis=-1, keepdims=True)
        p = jnp.exp(scores)
        p = (p / jnp.sum(p, axis=-1, keepdims=True)).astype(dtype)   # exact softmax
        ctx_parts.append(jnp.dot(p, v_h,
                                 preferred_element_type=jnp.float32))  # (tq, d_kv)

    ctx_blk = (ctx_parts[0] if heads_per_group == 1
               else jnp.concatenate(ctx_parts, axis=-1))             # (tq, hb)
    # One lane-dense store per group; no per-head accumulator read-modify-write.
    ctx_ref[g] = ctx_blk.astype(ctx_ref.dtype)

    @pl.when(g == num_groups - 1)
    def _finalize():
        # Deferred output projection (contraction K = hb per group, full MXU
        # depth for hb >= 128/256) + residual with the *un-normalized* hidden.
        hid = hid_ref[0]
        acc = hid.astype(jnp.float32)
        for gg in range(num_groups):
            acc = acc + jnp.dot(ctx_ref[gg], wo_ref[gg],
                                preferred_element_type=jnp.float32)   # (tq, D)
        out_ref[0] = acc.astype(out_ref.dtype)


# ---------------------------------------------------------------------------
# One-time parameter preparation (hoisted out of the per-call path).
# ---------------------------------------------------------------------------
def prepare_t5_cross_attention_params(ln_weight, wq, wk, wv, wo, *,
                                      n_heads, d_kv, max_group_cols=256):
    D, inner = wq.shape
    assert inner == n_heads * d_kv
    # Largest head-group size dividing n_heads with HB*d_kv <= max_group_cols
    # (targets 256-wide MXU output columns on v6e/v7x; use 128 for v5e).
    heads_per_group = 1
    for cand in range(n_heads, 0, -1):
        if n_heads % cand == 0 and cand * d_kv <= max_group_cols:
            heads_per_group = cand
            break
    n_groups = n_heads // heads_per_group
    hb = heads_per_group * d_kv
    return dict(
        lnw=ln_weight.reshape(1, D),
        wq_g=jnp.transpose(wq.reshape(D, n_groups, hb), (1, 0, 2)),  # (G, D, hb)
        wk_g=jnp.transpose(wk.reshape(D, n_groups, hb), (1, 0, 2)),  # (G, D, hb)
        wv_g=jnp.transpose(wv.reshape(D, n_groups, hb), (1, 0, 2)),  # (G, D, hb)
        wo_g=wo.reshape(n_groups, hb, D),                            # (G, hb, D)
        n_heads=n_heads, d_kv=d_kv, heads_per_group=heads_per_group,
        n_groups=n_groups, group_cols=hb, d_model=D, inner_dim=inner,
    )


# ---------------------------------------------------------------------------
# Forward wrapper.
# ---------------------------------------------------------------------------
def t5_layer_cross_attention(hidden_states, key_value_states, params, *,
                             eps=1e-6, q_tile=256):
    B, Lq, D = hidden_states.shape
    _, Lk, _ = key_value_states.shape
    dtype = hidden_states.dtype
    n_groups = params["n_groups"]
    hb = params["group_cols"]
    heads_per_group = params["heads_per_group"]
    d_kv = params["d_kv"]

    # ---- Kernel A: project K/V once per batch element (not per q-tile). ----
    k_proj, v_proj = pl.pallas_call(
        _kv_proj_kernel,
        out_shape=(jax.ShapeDtypeStruct((B, n_groups, Lk, hb), dtype),
                   jax.ShapeDtypeStruct((B, n_groups, Lk, hb), dtype)),
        grid_spec=pltpu.PrefetchScalarGridSpec(
            num_scalar_prefetch=0,
            grid=(B, n_groups),
            in_specs=[
                pl.BlockSpec((1, Lk, D), lambda b, g: (b, 0, 0)),   # kv states
                pl.BlockSpec((1, D, hb), lambda b, g: (g, 0, 0)),   # Wk group
                pl.BlockSpec((1, D, hb), lambda b, g: (g, 0, 0)),   # Wv group
            ],
            out_specs=[
                pl.BlockSpec((1, 1, Lk, hb), lambda b, g: (b, g, 0, 0)),
                pl.BlockSpec((1, 1, Lk, hb), lambda b, g: (b, g, 0, 0)),
            ],
        ),
        compiler_params=pltpu.CompilerParams(
            dimension_semantics=("parallel", "parallel")),
    )(key_value_states, params["wk_g"], params["wv_g"])

    # ---- q-tile selection: never silently fall back to a full-Lq tile. ----
    if Lq <= q_tile:
        tq = Lq
    else:
        tq = Lq
        for cand in range(min(q_tile, Lq), 7, -1):
            if Lq % cand == 0 and cand % 8 == 0:
                tq = cand
                break
    num_q_tiles = Lq // tq

    # ---- VMEM budget derived from the actual footprint (v7x has 64 MiB). ----
    ib = jnp.dtype(dtype).itemsize
    vmem_need = (
        2 * tq * D * ib                          # hidden block (double-buffered)
        + 2 * 2 * n_groups * Lk * hb * ib        # K and V blocks
        + 2 * D * ib                             # layer-norm weight
        + 2 * n_groups * D * hb * ib             # Wq (resident)
        + 2 * n_groups * hb * D * ib             # Wo (resident)
        + 2 * tq * D * ib                        # output block
        + tq * D * ib                            # normed scratch
        + n_groups * tq * hb * ib                # ctx scratch
        + 4 * tq * max(Lk, D) * 4                # score/softmax temporaries
    )
    vmem_limit = min(max(int(vmem_need * 1.5) + (4 << 20), 16 << 20), 64 << 20)

    kernel = functools.partial(
        _t5_cross_attn_kernel, eps=eps, d_kv=d_kv,
        heads_per_group=heads_per_group, num_groups=n_groups)

    layer_output = pl.pallas_call(
        kernel,
        out_shape=jax.ShapeDtypeStruct((B, Lq, D), dtype),
        grid_spec=pltpu.PrefetchScalarGridSpec(
            num_scalar_prefetch=0,
            grid=(B, num_q_tiles, n_groups),
            in_specs=[
                pl.BlockSpec((1, tq, D), lambda b, qi, g: (b, qi, 0)),          # hidden
                pl.BlockSpec((1, n_groups, Lk, hb),
                             lambda b, qi, g: (b, 0, 0, 0)),                    # K (per-b)
                pl.BlockSpec((1, n_groups, Lk, hb),
                             lambda b, qi, g: (b, 0, 0, 0)),                    # V (per-b)
                pl.BlockSpec((1, D), lambda b, qi, g: (0, 0)),                  # ln weight
                pl.BlockSpec((n_groups, D, hb), lambda b, qi, g: (0, 0, 0)),    # Wq resident
                pl.BlockSpec((n_groups, hb, D), lambda b, qi, g: (0, 0, 0)),    # Wo resident
            ],
            out_specs=pl.BlockSpec((1, tq, D), lambda b, qi, g: (b, qi, 0)),
            scratch_shapes=[
                pltpu.VMEM((tq, D), dtype),               # cached normed hidden
                pltpu.VMEM((n_groups, tq, hb), dtype),    # staged per-group ctx
            ],
        ),
        compiler_params=pltpu.CompilerParams(
            dimension_semantics=("parallel", "parallel", "arbitrary"),
            vmem_limit_bytes=vmem_limit,
        ),
    )(hidden_states, k_proj, v_proj, params["lnw"], params["wq_g"], params["wo_g"])

    # present_key_value_state is None (not a decoder / use_cache=False);
    # position_bias is identically zero (no relative-attention bias, no mask)
    # and is intentionally NOT materialized as an (1,H,Lq,Lk) HBM tensor.
    return layer_output, None, None


# ---------------------------------------------------------------------------
# Pure-JAX reference mirroring the PyTorch module (eval mode).
# ---------------------------------------------------------------------------
def _reference_forward(hid, kv, lnw, wq, wk, wv, wo, n_heads, d_kv, eps=1e-6):
    var = jnp.mean(hid.astype(jnp.float32) ** 2, axis=-1, keepdims=True)
    normed = (hid * lax.rsqrt(var + eps)) * lnw
    B, Lq, _ = hid.shape
    Lk = kv.shape[1]
    q = normed @ wq
    k = kv @ wk
    v = kv @ wv
    split = lambda x, L: x.reshape(B, L, n_heads, d_kv).transpose(0, 2, 1, 3)
    qh, kh, vh = split(q, Lq), split(k, Lk), split(v, Lk)
    scores = jnp.einsum('bhqd,bhkd->bhqk', qh, kh)
    attn = jax.nn.softmax(scores.astype(jnp.float32), axis=-1).astype(scores.dtype)
    ctx = jnp.einsum('bhqk,bhkd->bhqd', attn, vh).transpose(0, 2, 1, 3).reshape(B, Lq, -1)
    return hid + ctx @ wo


if __name__ == "__main__":
    # Small T5-like config exercising multiple q-tiles, head-groups and
    # heads-per-group (HB=2, n_groups=2 via max_group_cols=32).
    B, Lq, Lk = 2, 16, 24
    d_model, n_heads, d_kv = 64, 4, 16
    inner = n_heads * d_kv

    key = jax.random.PRNGKey(0)
    k_h, k_kv, k_q, k_k, k_v, k_o = jax.random.split(key, 6)

    hidden_states = jax.random.normal(k_h, (B, Lq, d_model), dtype=jnp.float32)
    key_value_states = jax.random.normal(k_kv, (B, Lk, d_model), dtype=jnp.float32)

    # Deterministic synthetic parameters (layer-norm weight = ones, as in module init).
    ln_weight = jnp.ones((d_model,), dtype=jnp.float32)
    wq = 0.05 * jax.random.normal(k_q, (d_model, inner), dtype=jnp.float32)
    wk = 0.05 * jax.random.normal(k_k, (d_model, inner), dtype=jnp.float32)
    wv = 0.05 * jax.random.normal(k_v, (d_model, inner), dtype=jnp.float32)
    wo = 0.05 * jax.random.normal(k_o, (inner, d_model), dtype=jnp.float32)

    # One-time parameter prep (hoisted out of the forward path).
    params = prepare_t5_cross_attention_params(
        ln_weight, wq, wk, wv, wo, n_heads=n_heads, d_kv=d_kv, max_group_cols=32)

    out, present_kv, pos_bias = t5_layer_cross_attention(
        hidden_states, key_value_states, params, eps=1e-6, q_tile=8)
    out = jax.block_until_ready(out)

    ref = _reference_forward(hidden_states, key_value_states, ln_weight,
                             wq, wk, wv, wo, n_heads, d_kv)
    assert out.shape == (B, Lq, d_model)
    assert jnp.allclose(out, ref, rtol=1e-3, atol=1e-3), "mismatch vs reference"
    print("KERNEL_OK")
</pallas_src>

<mosaic_0001>
module attributes {stable_mosaic.version = 11 : i64} {
  func.func @_kv_proj_kernel(%arg0: i32, %arg1: i32, %arg2: memref<1x24x64xf32, #tpu.memory_space<vmem>>, %arg3: memref<1x64x32xf32, #tpu.memory_space<vmem>>, %arg4: memref<1x64x32xf32, #tpu.memory_space<vmem>>, %arg5: memref<1x1x24x32xf32, #tpu.memory_space<vmem>>, %arg6: memref<1x1x24x32xf32, #tpu.memory_space<vmem>>) attributes {dimension_semantics = [#tpu.dimension_semantics<parallel>, #tpu.dimension_semantics<parallel>], iteration_bounds = array<i64: 2, 2>, scalar_prefetch = 0 : i64, scratch_operands = 0 : i64, tpu.core_type = #tpu.core_type<tc>, window_params = [{transform_indices = @transform_0, window_bounds = array<i64: 1, 24, 64>}, {transform_indices = @transform_1, window_bounds = array<i64: 1, 64, 32>}, {transform_indices = @transform_2, window_bounds = array<i64: 1, 64, 32>}, {transform_indices = @transform_3, window_bounds = array<i64: 1, 1, 24, 32>}, {transform_indices = @transform_4, window_bounds = array<i64: 1, 1, 24, 32>}]} {
    %c0 = arith.constant 0 : index
    %c0_0 = arith.constant 0 : index
    %c0_1 = arith.constant 0 : index
    %0 = vector.load %arg2[%c0, %c0_0, %c0_1] : memref<1x24x64xf32, #tpu.memory_space<vmem>>, vector<1x24x64xf32>
    %1 = vector.shape_cast %0 : vector<1x24x64xf32> to vector<24x64xf32>
    %c0_2 = arith.constant 0 : index
    %c0_3 = arith.constant 0 : index
    %c0_4 = arith.constant 0 : index
    %2 = vector.load %arg3[%c0_2, %c0_3, %c0_4] : memref<1x64x32xf32, #tpu.memory_space<vmem>>, vector<1x64x32xf32>
    %3 = vector.shape_cast %2 : vector<1x64x32xf32> to vector<64x32xf32>
    %cst = arith.constant dense<0.000000e+00> : vector<24x32xf32>
    %4 = tpu.matmul %1, %3, %cst {dimension_numbers = #tpu.dot_dimension_numbers<[1], [0], [0], [1], [0, 0, 1, 1], [], []>} : vector<24x64xf32>, vector<64x32xf32>, vector<24x32xf32> -> vector<24x32xf32>
    %c0_5 = arith.constant 0 : index
    %c0_6 = arith.constant 0 : index
    %c0_7 = arith.constant 0 : index
    %c0_8 = arith.constant 0 : index
    %5 = vector.load %arg5[%c0_5, %c0_6, %c0_7, %c0_8] : memref<1x1x24x32xf32, #tpu.memory_space<vmem>>, vector<1x1x24x32xf32>
    %6 = vector.shape_cast %5 : vector<1x1x24x32xf32> to vector<24x32xf32>
    %7 = vector.shape_cast %4 : vector<24x32xf32> to vector<1x1x24x32xf32>
    tpu.vector_store %arg5[%c0_5, %c0_6, %c0_7, %c0_8], %7 {strides = array<i32>} : memref<1x1x24x32xf32, #tpu.memory_space<vmem>>, vector<1x1x24x32xf32>,
    %c0_9 = arith.constant 0 : index
    %c0_10 = arith.constant 0 : index
    %c0_11 = arith.constant 0 : index
    %8 = vector.load %arg4[%c0_9, %c0_10, %c0_11] : memref<1x64x32xf32, #tpu.memory_space<vmem>>, vector<1x64x32xf32>
    %9 = vector.shape_cast %8 : vector<1x64x32xf32> to vector<64x32xf32>
    %cst_12 = arith.constant dense<0.000000e+00> : vector<24x32xf32>
    %10 = tpu.matmul %1, %9, %cst_12 {dimension_numbers = #tpu.dot_dimension_numbers<[1], [0], [0], [1], [0, 0, 1, 1], [], []>} : vector<24x64xf32>, vector<64x32xf32>, vector<24x32xf32> -> vector<24x32xf32>
    %c0_13 = arith.constant 0 : index
    %c0_14 = arith.constant 0 : index
    %c0_15 = arith.constant 0 : index
    %c0_16 = arith.constant 0 : index
    %11 = vector.load %arg6[%c0_13, %c0_14, %c0_15, %c0_16] : memref<1x1x24x32xf32, #tpu.memory_space<vmem>>, vector<1x1x24x32xf32>
    %12 = vector.shape_cast %11 : vector<1x1x24x32xf32> to vector<24x32xf32>
    %13 = vector.shape_cast %10 : vector<24x32xf32> to vector<1x1x24x32xf32>
    tpu.vector_store %arg6[%c0_13, %c0_14, %c0_15, %c0_16], %13 {strides = array<i32>} : memref<1x1x24x32xf32, #tpu.memory_space<vmem>>, vector<1x1x24x32xf32>,
    return
  }
  func.func @transform_0(%arg0: i32, %arg1: i32) -> (i32, i32, i32) {
    %c0_i32 = arith.constant 0 : i32
    %c0_i32_0 = arith.constant 0 : i32
    %c0_i32_1 = arith.constant 0 : i32
    return %arg0, %c0_i32, %c0_i32_0 : i32, i32, i32
  }
  func.func @transform_1(%arg0: i32, %arg1: i32) -> (i32, i32, i32) {
    %c0_i32 = arith.constant 0 : i32
    %c0_i32_0 = arith.constant 0 : i32
    %c0_i32_1 = arith.constant 0 : i32
    return %arg1, %c0_i32, %c0_i32_0 : i32, i32, i32
  }
  func.func @transform_2(%arg0: i32, %arg1: i32) -> (i32, i32, i32) {
    %c0_i32 = arith.constant 0 : i32
    %c0_i32_0 = arith.constant 0 : i32
    %c0_i32_1 = arith.constant 0 : i32
    return %arg1, %c0_i32, %c0_i32_0 : i32, i32, i32
  }
  func.func @transform_3(%arg0: i32, %arg1: i32) -> (i32, i32, i32, i32) {
    %c0_i32 = arith.constant 0 : i32
    %c0_i32_0 = arith.constant 0 : i32
    %c0_i32_1 = arith.constant 0 : i32
    return %arg0, %arg1, %c0_i32, %c0_i32_0 : i32, i32, i32, i32
  }
  func.func @transform_4(%arg0: i32, %arg1: i32) -> (i32, i32, i32, i32) {
    %c0_i32 = arith.constant 0 : i32
    %c0_i32_0 = arith.constant 0 : i32
    %c0_i32_1 = arith.constant 0 : i32
    return %arg0, %arg1, %c0_i32, %c0_i32_0 : i32, i32, i32, i32
  }
}

</mosaic_0001>

<bundles_post_ra>
// kernel: tpu_custom_call.1
= control target key start
LH: loop header
LB: loop body
LE: loop exit
PB: predicated region body
PF: predicated region fallthrough
CT: control target
= control target key end

     0   :  { %s985_s0 = inlined_call_operand.vmem [shape: f32[2,24,64], index: 0, kind: input, shape index: {}]   ;;  %s986_s1 = inlined_call_operand.vmem [shape: f32[2,64,32], index: 1, kind: input, shape index: {}]   ;;  %s987_s2 = inlined_call_operand.vmem [shape: f32[2,64,32], index: 2, kind: input, shape index: {}]   ;;  %s988_s3 = inlined_call_operand.hbm [shape: f32[2,2,24,32], index: 3, kind: output, shape index: {0}]   ;;  %s989_s4 = inlined_call_operand.hbm [shape: f32[2,2,24,32], index: 4, kind: output, shape index: {1}]  }
   0x1   :  { %990 = sst [smem:[#allocation8_spill]] %s985_s0 }
   0x2   :  { %991 = sst [smem:[#allocation9_spill]] %s986_s1 }
   0x3   :  { %10 = vsyncpa [#allocation3], 0 }
   0x4   :  { %12 = vsyncpa [#allocation3 + $0x1], 0 }
   0x5   :  { %13 = vsyncpa [#allocation5], 0 }
   0x6   :  { %15 = vsyncpa [#allocation5 + $0x1], 0  ;;  %s806_s15 = smov 0   ;;  %s808_s16 = smov 0  }
   0x7   :  { %s810_s17 = smov 0   ;;  %s812_s18 = smov 0  }
   0x8   :  { %s814_s19 = smov 0   ;;  %s816_s20 = smov 0  }
   0x9   :  { %s818_s21 = smov 0   ;;  %s820_s22 = smov 0  }
   0xa LB: > { %s529_s23 = sadd.s32 4294967295, %s777_s22   ;;  %s530_s24 = sadd.s32 4294967294, %s777_s22   ;;  %s777_s22 = sphi %s820_s22, %s21_s22   ;;  %s773_s21 = sphi %s818_s21, %s1002_s21   ;;  %s769_s20 = sphi %s816_s20, %s1001_s20   ;;  %s765_s19 = sphi %s814_s19, %s1000_s19   ;;  %s761_s18 = sphi %s812_s18, %s999_s18   ;;  %s757_s17 = sphi %s810_s17, %s998_s17   ;;  %s753_s16 = sphi %s808_s16, %s997_s16   ;;  %s749_s15 = sphi %s806_s15, %s996_s15  }
   0xb   : > { %s30_s25 = sadd.s32 1, %s769_s20  ;;  %s33_s26 = sadd.s32 1, %s773_s21 }
   0xc   : > { %p31_p0 = scmp.ge.s32.totalorder %s30_s25, 2  ;;  %p130_p1 = scmp.ne.s32.totalorder %s757_s17, %s753_s16 }
   0xd   : > { %p131_p2 = scmp.eq.s32.totalorder %s529_s23, 3  ;;  %p136_p5 = scmp.ne.s32.totalorder %s753_s16, %s749_s15 }
   0xe   : > { %s1004_s25 = smov (%p31_p0, %s30_s25), 0  ;;  %s1006_s26 = smov (!%p31_p0, %s33_s26), %s773_s21 }
   0xf   : > { %s116_s27 = ssub.s32 %s769_s20, %s1004_s25  ;;  %p857_p3 = por %p131_p2, %p130_p1 }
  0x10   : > { %p35_p4 = scmp.ge.s32.totalorder %s1006_s26, 2  ;;  %p137_p6 = scmp.eq.s32.totalorder %s530_s24, 3 }
  0x11   : > { %p533_p7 = scmp.ge.s32.totalorder %s777_s22, 1  ;;  %p207_p9 = scmp.lt.s32.totalorder %s777_s22, 5 }
  0x12   : > { %s1008_s26 = smov (%p35_p4, %s1006_s26), 0  ;;  %p866_p8 = por %p137_p6, %p136_p5 }
  0x13   : > { %s115_s30 = ssub.s32 %s773_s21, %s1008_s26  ;;  %s120_s5 = sadd.s32 1, %s757_s17 }
  0x14   : > { %s117_s6 = sor.u32 %s116_s27, %s115_s30  ;;  %p208_p10 = pnand %p533_p7, %p207_p9 }
  0x15   : > { %p118_p11 = scmp.eq.s32.totalorder %s117_s6, 0  ;;  %p253_p12 = scmp.lt.s32.totalorder (!%p208_p10), %s761_s18, 1 }
  0x16   : > { %211 = sbr.rel (%p208_p10) target bundleno = 204 (0xcc), region = 32  ;;  %p248_p13 = scmp.lt.s32.totalorder (!%p208_p10), %s765_s19, 1 }
  0x17   : > { %s875_s7 = scalar_select %p118_p11, %s757_s17, %s120_s5  }
  0x18   : > { %s994_s1 = sld [smem:[#allocation9_spill]] (!%p208_p10)  ;;  %s569_s10 = smul.u32 (!%p208_p10), 3, %s761_s18 }
  0x19   : > { %s995_s0 = sld [smem:[#allocation8_spill]] (!%p208_p10)  ;;  %s570_s11 = smul.u32 (!%p208_p10), 6, %s765_s19 }
  0x1b   : > { %s254_s8 = scalar_select %p253_p12, %s761_s18, 1  ;;  %vm274_vm0 = vcmask 523264   ;;  %vm310_vm1 = vcmask 261120  }
  0x1c   : > { %s249_s24 = scalar_select %p248_p13, %s765_s19, 1 }
  0x1d   : > { %s549_s9 = sshll.u32 %s254_s8, 6  ;;  %s911_s8 = sand.u32 1, %s753_s16  }
  0x1e   : > { %s883_s12 = scalar_lea.vmem %s994_s1, %s549_s9  ;;  %s888_s23 = scalar_lea.vmem %s987_s2, %s549_s9 }
  0x1f   : > { %v273_v0 = vld [vmem:[%s883_s12 + $0x38] sm:$0xff]  ;;  %v272_v2 = vld [vmem:[%s883_s12 + $0x30] sm:$0xff]  ;;  %v271_v4 = vld [vmem:[%s883_s12 + $0x28] sm:$0xff]  ;;  %s568_s27 = smul.u32 24, %s249_s24 }
  0x20   : > { %v321_v1 = vld [vmem:[%s888_s23 + $0x38] sm:$0xff]  ;;  %551 = vmatpush.msra.mxu2 %v273_v0  ;;  %v320_v3 = vld [vmem:[%s888_s23 + $0x30] sm:$0xff]  ;;  %v319_v5 = vld [vmem:[%s888_s23 + $0x28] sm:$0xff]  ;;  %292 = vmatpush.msra.mxu0 %v273_v0  ;;  %s567_s9 = smul.u32 24, %s911_s8 }
  0x21   : > { %559 = vmatpush.msra.mxu3 %v321_v1  ;;  %330 = vmatpush.msra.mxu1 %v321_v1  ;;  %v270_v6 = vld [vmem:[%s883_s12 + $0x20] sm:$0xff]  ;;  %v269_v8 = vld [vmem:[%s883_s12 + $0x18] sm:$0xff]  ;;  %v268_v10 = vld [vmem:[%s883_s12 + $0x10] sm:$0xff]  ;;  %s252_s6 = scalar_lea.vmem %s995_s0, %s568_s27  ;;  %s671_s27 = scalar_lea.hbm %s988_s3, 96 }
  0x22   : > { %552 = vmatpush.msra.mxu2 %v272_v2  ;;  %v318_v7 = vld [vmem:[%s888_s23 + $0x20] sm:$0xff]  ;;  %293 = vmatpush.msra.mxu0 %v272_v2  ;;  %v317_v9 = vld [vmem:[%s888_s23 + $0x18] sm:$0xff]  ;;  %v316_v11 = vld [vmem:[%s888_s23 + $0x10] sm:$0xff]  ;;  %s240_s13 = scalar_lea.vmem [#allocation2], %s567_s9  ;;  %s247_s14 = scalar_lea.vmem [#allocation4], %s567_s9 }
  0x23   : > { %560 = vmatpush.msra.mxu3 %v320_v3  ;;  %331 = vmatpush.msra.mxu1 %v320_v3  ;;  %v267_v12 = vld [vmem:[%s883_s12 + $0x8] sm:$0xff]  ;;  %v266_v14 = vld [vmem:[%s883_s12] sm:$0xff]  ;;  %v265_v18 = vld [vmem:[%s252_s6 + $0x10] sm:$0xff]  ;;  %s368_s12 = sadd.s32 %s570_s11, %s569_s10  ;;  %s390_s10 = sshll.u32 %s247_s14, 4  ;;  %s926_s10 = int_to_ptr.vmem [resolvable:$true] %s390_s10 }
  0x24   : > { %553 = vmatpush.msra.mxu2 %v271_v4  ;;  %294 = vmatpush.msra.mxu0 %v271_v4  ;;  %v315_v13 = vld [vmem:[%s888_s23 + $0x8] sm:$0xff]  ;;  %v314_v15 = vld [vmem:[%s888_s23] sm:$0xff]  ;;  %s545_s23 = sshll.u32 %s368_s12, 3  ;;  %s352_s12 = scalar_lea.sflag [#allocation3], %s911_s8 }
  0x25   : > { %561 = vmatpush.msra.mxu3 %v319_v5  ;;  %332 = vmatpush.msra.mxu1 %v319_v5  ;;  %v264_v16 = vld [vmem:[%s252_s6 + $0x8] sm:$0xff]  ;;  %v263_v17 = vld [vmem:[%s252_s6] sm:$0xff]  ;;  %s370_s24 = scalar_lea.hbm %s988_s3, %s545_s23  ;;  %s389_s5 = scalar_lea.hbm %s989_s4, %s545_s23 }
  0x26   : > { %554 = vmatpush.msra.mxu2 %v270_v6  ;;  %295 = vmatpush.msra.mxu0 %v270_v6  ;;  %s371_s6 = sshll.u32 %s240_s13, 4  ;;  %s373_s9 = sshll.u32 %s370_s24, 4  ;;  %s372_s6 = int_to_ptr.vmem [resolvable:$true] %s371_s6  ;;  %s374_s9 = int_to_ptr.hbm [resolvable:$true] %s373_s9 }
  0x27   : > { %562 = vmatpush.msra.mxu3 %v318_v7  ;;  %333 = vmatpush.msra.mxu1 %v318_v7  ;;  %s392_s11 = sshll.u32 %s389_s5, 4  ;;  %s665_s18 = sshra.s32 %s374_s9, 4  ;;  %s929_s11 = int_to_ptr.hbm [resolvable:$true] %s392_s11  ;;  %s666_s18 = int_to_ptr.hbm [resolvable:$true] %s665_s18 }
  0x28   : > { %555 = vmatpush.msra.mxu2 %v269_v8  ;;  %296 = vmatpush.msra.mxu0 %v269_v8  ;;  %s667_s23 = scalar_lea.hbm %s666_s18, 24  ;;  %p672_p4 = scmp.lt.s32.totalorder %s666_s18, %s988_s3 }
  0x29   : > { %563 = vmatpush.msra.mxu3 %v317_v9  ;;  %334 = vmatpush.msra.mxu1 %v317_v9  ;;  %p668_p0 = scmp.ne.s32.totalorder %s666_s18, %s667_s23  ;;  %p673_p5 = scmp.lt.s32.totalorder %s671_s27, %s667_s23 }
  0x2a   : > { %556 = vmatpush.msra.mxu2 %v268_v10  ;;  %297 = vmatpush.msra.mxu0 %v268_v10 }
  0x2b   : > { %564 = vmatpush.msra.mxu3 %v316_v11  ;;  %335 = vmatpush.msra.mxu1 %v316_v11  ;;  %p669_p1 = pnand %p668_p0, %p857_p3  ;;  %p674_p6 = por %p673_p5, %p672_p4 }
  0x2c   : > { %557 = vmatpush.msra.mxu2 %v267_v12  ;;  %298 = vmatpush.msra.mxu0 %v267_v12 }
  0x2d   : > { %565 = vmatpush.msra.mxu3 %v315_v13  ;;  %336 = vmatpush.msra.mxu1 %v315_v13  ;;  %p670_p2 = pneg %p669_p1 }
  0x2e   : > { %558 = vmatpush.msra.mxu2 %v266_v14  ;;  %299 = vmatpush.msra.mxu0 %v266_v14 }
  0x2f   : > { %566 = vmatpush.msra.mxu3 %v314_v15  ;;  %540 = vmatmul.msk.f32.vlgmr.msra.gmra.mxu2 %vm274_vm0, %v264_v16  ;;  %p675_p7 = pnand %p674_p6, %p670_p2 }
  0x30   : > { %543 = vmatmul.msk.f32.vlgmr.msra.gmra.mxu3 %vm274_vm0, %v264_v16  ;;  %337 = vmatpush.msra.mxu1 %v314_v15 }
  0x31   : > { %539 = vmatmul.msk.f32.vlgmr.msra.gmra.mxu0 %vm274_vm0, %v263_v17  ;;  %542 = vmatmul.msk.f32.vlgmr.msra.gmra.mxu1 %vm274_vm0, %v263_v17 }
  0x37   : > { %541 = vmatmul.msk.f32.gmra.mxu2 %vm274_vm0, %v265_v18 }
  0x38   : > { %544 = vmatmul.msk.f32.gmra.mxu3 %vm274_vm0, %v265_v18 }
  0xae   : > { %v301_v19 = vpop.f32.mrf.mxu0  ;;  %v339_v20 = vpop.f32.mrf.mxu1 }
  0xaf   : > { %311 = vst.msk [vmem:[%s240_s13] sm:$0xff] %vm310_vm1, %v301_v19 }
  0xb0   : > { %348 = vst.msk [vmem:[%s247_s14] sm:$0xff] %vm310_vm1, %v339_v20 }
  0xb2   : > { %v304_v21 = vpop.f32.mrf.mxu2 }
  0xb3   : > { %v342_v22 = vpop.f32.mrf.mxu3  ;;  %312 = vst.msk [vmem:[%s240_s13 + $0x8] sm:$0xff] %vm310_vm1, %v304_v21 }
  0xb4   : > { %349 = vst.msk [vmem:[%s247_s14 + $0x8] sm:$0xff] %vm310_vm1, %v342_v22 }
  0xba   : > { %v307_v23 = vpop.f32.mrf.mxu2 }
  0xbb   : > { %v345_v24 = vpop.f32.mrf.mxu3  ;;  %313 = vst.msk [vmem:[%s240_s13 + $0x10] sm:$0xff] %vm310_vm1, %v307_v23 }
  0xbc   : > { %350 = vst.msk [vmem:[%s247_s14 + $0x10] sm:$0xff] %vm310_vm1, %v345_v24 }
  0xbd   : > { %678 = shalt.err (!%p675_p7)
}
  0xbe   : > { %s779_s13 = smov 128   ;;  %s780_s14 = smov 8  }
  0xbf   : > { %573 = dma.vmem_to_hbm [thread:$0]  (%p857_p3), %s372_s6, 384, %s374_s9, %s352_s12, %s779_s13, %s779_s13, %s780_s14  }
  0xc0   : > { %s357_s0 = scalar_lea.sflag [#allocation5], %s911_s8  ;;  %s693_s1 = sshra.s32 %s929_s11, 4  ;;  %s694_s1 = int_to_ptr.hbm [resolvable:$true] %s693_s1 }
  0xc1   : > { %s695_s19 = scalar_lea.hbm %s694_s1, 24  ;;  %s699_s24 = scalar_lea.hbm %s989_s4, 96 }
  0xc2   : > { %p696_p9 = scmp.ne.s32.totalorder %s694_s1, %s695_s19  ;;  %p700_p12 = scmp.lt.s32.totalorder %s694_s1, %s989_s4 }
  0xc3   : > { %p701_p13 = scmp.lt.s32.totalorder %s699_s24, %s695_s19 }
  0xc4   : > { %p697_p10 = pnand %p696_p9, %p857_p3 }
  0xc5   : > { %p702_p0 = por %p701_p13, %p700_p12 }
  0xc6   : > { %p698_p11 = pneg %p697_p10 }
  0xc8   : > { %p703_p1 = pnand %p702_p0, %p698_p11 }
  0xca   : > { %706 = shalt.err (!%p703_p1)
}
  0xcb   : > { %574 = dma.vmem_to_hbm [thread:$0]  (%p857_p3), %s926_s10, 384, %s929_s11, %s357_s0, %s779_s13, %s779_s13, %s780_s14  }
  0xcc PF: > { %p584_p2 = scmp.ge.s32.totalorder %s777_s22, 2  ;;  %s407_s8 = sand.u32 1, %s749_s15  }
  0xcd   : > { %s408_s6 = scalar_lea.sflag [#allocation3], %s407_s8 }
  0xce   : > { %p578_p4 = pnand %p584_p2, %p866_p8 }
  0xd0   : > { %p579_p5 = pneg %p578_p4 }
  0xd2   : > { %740 = dma.done.wait (%p579_p5), %s408_s6, 384  }
  0xd3   : > { %742 = vsyncadd (%p579_p5), %s408_s6, 4294966912  ;;  %s418_s1 = scalar_lea.sflag [#allocation5], %s407_s8 }
  0xd4   : > { %744 = dma.done.wait (%p579_p5), %s418_s1, 384  }
  0xd5   : > { %746 = vsyncadd (%p579_p5), %s418_s1, 4294966912  ;;  %s21_s22 = sadd.s32 1, %s777_s22   ;;  %s996_s15 = smov %s753_s16 }
  0xd6   : > { %p18_p6 = scmp.ge.s32.totalorder %s21_s22, 6   ;;  %s997_s16 = smov %s757_s17 }
  0xd7   : > { %s998_s17 = smov %s875_s7  ;;  %s999_s18 = smov %s769_s20 }
  0xd8   : > { %s1000_s19 = smov %s773_s21  ;;  %s1001_s20 = smov %s1004_s25 }
  0xd9   : > { %s1002_s21 = smov %s1008_s26  ;;  %20 = sbr.rel (!%p18_p6) target bundleno = 10 (0xa), region = 90 }
  0xde   :  { %424 = vsyncpa [#allocation3], 1 }
  0xdf   :  { %426 = vsyncpa [#allocation3 + $0x1], 1 }
  0xe0   :  { %427 = vsyncpa [#allocation5], 1 }
  0xe1   :  { %429 = vsyncpa [#allocation5 + $0x1], 1 }

</bundles_post_ra>
